<compile_context>
chip_gen: v7x
topology: tpu7x:2x2x1
jax: 0.10.0
libtpu: 0.0.40
codegen_flags: <defaults>
</compile_context>

<pallas_src>
import functools

import jax
import jax.numpy as jnp
from jax.experimental import pallas as pl
from jax.experimental.pallas import tpu as pltpu

LANE = 128
SUBLANE = 8


def _round_up(v, m):
    return ((v + m - 1) // m) * m


def _fused_mlp_kernel(x_ref, *refs, relu_flags):
    """Runs one batch tile through every layer; activations stay in VMEM/vregs."""
    o_ref = refs[-1]
    layer_refs = refs[:-1]
    n_layers = len(relu_flags)
    # f32 -> bf16 cast of the first activation happens here (no wrapper pass).
    h = x_ref[...].astype(jnp.bfloat16)
    for li, relu in enumerate(relu_flags):
        w_ref = layer_refs[2 * li]                    # bf16 [K, Dout_pad]
        b_ref = layer_refs[2 * li + 1]                # f32  [1, Dout_pad]
        y = jnp.dot(h, w_ref[...], preferred_element_type=jnp.float32)   # MXU
        y = y + b_ref[...]                            # f32 elementwise (VPU)
        if relu:
            y = jnp.maximum(y, 0.0)
        # bf16 operand for the next MXU matmul; keep f32 for the final store.
        h = y.astype(jnp.bfloat16) if li + 1 < n_layers else y
    o_ref[...] = h.astype(o_ref.dtype)
    # TODO(synk): for very wide hidden layers (Dout_pad >= 512) sub-tile the
    # output-feature dim here to bound vreg/VMEM pressure of the intermediate.


def _choose_tile(n, tile_n, vmem_need_fn, budget_bytes):
    tile = min(_round_up(tile_n, SUBLANE), _round_up(n, SUBLANE))
    # v7x has 2 TensorCores; with dimension_semantics=("parallel",) the batch
    # axis only shards across them when the grid has >= 2 steps.
    if pl.cdiv(n, tile) < 2 and n >= 2 * SUBLANE:
        tile = _round_up(pl.cdiv(n, 2), SUBLANE)
    # Shrink until the estimated VMEM footprint fits the budget (v7x: 64 MiB/TC).
    while tile > SUBLANE and vmem_need_fn(tile) > budget_bytes:
        tile = max(SUBLANE, _round_up(tile // 2, SUBLANE))
    return tile


def linear_mlp_forward(x, params, *, tile_n=512):
    """x: [N, D0].  params: output of init_linear_mlp_params (padded bf16
    weights + padded f32 shifts, built once at init)."""
    n, d_in = x.shape
    assert d_in == params["d_in"], (d_in, params["d_in"])
    weights = params["weights"]
    shifts = params["shifts"]
    relu_flags = params["relu"]
    d_out = params["d_out"]
    d_out_pad = weights[-1].shape[1]
    widest = max(w.shape[1] for w in weights)

    x_itemsize = x.dtype.itemsize
    wgt_bytes = sum(w.size * w.dtype.itemsize + b.size * b.dtype.itemsize
                    for w, b in zip(weights, shifts))

    def vmem_need(tile, weight_buffers=1):
        need = 2 * tile * d_in * x_itemsize            # x tile (double-buffered)
        need += 2 * tile * d_out_pad * 4               # out tile (double-buffered)
        need += weight_buffers * wgt_bytes             # resident weights/shifts
        need += tile * widest * (4 + 2)                # live f32 y + bf16 h
        return need

    tile = _choose_tile(n, tile_n, vmem_need, budget_bytes=40 * 2 ** 20)
    num_tiles = pl.cdiv(n, tile)

    flops = 2 * n * sum(w.shape[0] * w.shape[1] for w in weights)
    bytes_accessed = n * d_in * x_itemsize + wgt_bytes + n * d_out_pad * 4
    cost = pl.CostEstimate(flops=int(flops), transcendentals=0,
                           bytes_accessed=int(bytes_accessed))

    kernel = functools.partial(_fused_mlp_kernel, relu_flags=relu_flags)
    x_spec = pl.BlockSpec((tile, d_in), lambda i: (i, 0))
    out_spec = pl.BlockSpec((tile, d_out_pad), lambda i: (i, 0))
    const_map = lambda i: (0, 0)

    flat_inputs = [x]
    for w, b in zip(weights, shifts):
        flat_inputs += [w, b]

    def run(single_buffer_weights):
        in_specs = [x_spec]
        for w, b in zip(weights, shifts):
            if single_buffer_weights:
                # Grid-invariant operands: single-buffer so resident weights
                # don't pay the 2x double-buffering VMEM tax.
                in_specs += [
                    pl.BlockSpec(w.shape, const_map, pipeline_mode=pl.Buffered(1)),
                    pl.BlockSpec(b.shape, const_map, pipeline_mode=pl.Buffered(1)),
                ]
            else:
                in_specs += [pl.BlockSpec(w.shape, const_map),
                             pl.BlockSpec(b.shape, const_map)]
        nbuf = 1 if single_buffer_weights else 2
        vmem_limit = int(min(100 * 2 ** 20,
                             max(32 * 2 ** 20,
                                 vmem_need(tile, nbuf) + 16 * 2 ** 20)))
        return pl.pallas_call(
            kernel,
            out_shape=jax.ShapeDtypeStruct((n, d_out_pad), jnp.float32),
            grid=(num_tiles,),
            in_specs=in_specs,
            out_specs=out_spec,
            compiler_params=pltpu.CompilerParams(
                dimension_semantics=("parallel",),      # shard batch tiles on v7x
                vmem_limit_bytes=vmem_limit),
            cost_estimate=cost,
        )(*flat_inputs)

    try:
        out_pad = run(single_buffer_weights=True)
    except Exception:
        # pl.Buffered(1) not supported by this JAX/Mosaic build: fall back to
        # default (double-buffered, still grid-invariant) weight specs.
        out_pad = run(single_buffer_weights=False)

    # Batch axis is never padded; slice only when Dout is not lane-aligned.
    return out_pad if d_out == d_out_pad else out_pad[:, :d_out]


def init_linear_mlp_params(key, mlp_spec):
    """Deterministic synthetic parameters matching LinearMLP's layer structure.

    Eval-mode BatchNorm1d is folded into (W, shift).  The padded / bf16 device
    copies are built HERE (once), so linear_mlp_forward does no per-call weight
    padding or casting.

    Returns:
      params : dict consumed by linear_mlp_forward.
      folded : list of (w_folded_f32, shift_f32, relu) for the matched reference.
      raw    : unfolded parameters for the full-f32 module reference.
    """
    # TODO(synk): training-mode BatchNorm1d (batch statistics) and checkpoint
    # loading / custom init cfgs are not represented; eval-mode BN is folded.
    n_layers = len(mlp_spec) - 1
    eps = 1e-5
    folded, raw = [], []
    for i in range(n_layers):
        d_in, d_out = mlp_spec[i], mlp_spec[i + 1]
        key, kw, kb, kg, kbeta, km, kv = jax.random.split(key, 7)
        bound = 1.0 / jnp.sqrt(jnp.float32(d_in))
        w = jax.random.uniform(kw, (d_in, d_out), jnp.float32, -bound, bound)
        last = i == n_layers - 1
        if last:
            bias = jax.random.uniform(kb, (1, d_out), jnp.float32, -bound, bound)
            folded.append((w, bias, False))
            raw.append(dict(w=w, bias=bias, bn=None, relu=False))
        else:
            gamma = 1.0 + 0.1 * jax.random.normal(kg, (1, d_out), jnp.float32)
            beta = 0.1 * jax.random.normal(kbeta, (1, d_out), jnp.float32)
            mean = 0.1 * jax.random.normal(km, (1, d_out), jnp.float32)
            var = jax.random.uniform(kv, (1, d_out), jnp.float32, 0.5, 1.5)
            scale = gamma / jnp.sqrt(var + eps)
            shift = beta - mean * scale
            folded.append((w * scale, shift, True))     # BN scale folded into W
            raw.append(dict(w=w, bias=None,
                            bn=(gamma, beta, mean, var, eps), relu=True))

    # Pad ONCE (Dout -> multiple of 128 lanes; K of hidden layers -> previous
    # padded Dout) and cast to bf16.  First layer keeps its true K so the x DMA
    # is not inflated for narrow inputs.  Zero padding is exact for this math.
    weights, shifts, relus = [], [], []
    for i, (w, shift, relu) in enumerate(folded):
        k_true, dout_true = w.shape
        k_pad = k_true if i == 0 else _round_up(k_true, LANE)
        dout_pad = _round_up(dout_true, LANE)
        w_pad = jnp.zeros((k_pad, dout_pad), jnp.bfloat16)
        w_pad = w_pad.at[:k_true, :dout_true].set(w.astype(jnp.bfloat16))
        b_pad = jnp.zeros((1, dout_pad), jnp.float32)
        b_pad = b_pad.at[:, :dout_true].set(shift)
        weights.append(w_pad)
        shifts.append(b_pad)
        relus.append(relu)

    params = dict(weights=weights, shifts=shifts, relu=tuple(relus),
                  d_in=mlp_spec[0], d_out=mlp_spec[-1])
    return params, folded, raw


def reference_matched(x, folded):
    """Pure-JAX reference mirroring the kernel's precision (bf16 matmul
    operands, f32 accumulation and f32 elementwise)."""
    n_layers = len(folded)
    h = x.astype(jnp.bfloat16)
    for li, (w, shift, relu) in enumerate(folded):
        y = jnp.dot(h, w.astype(jnp.bfloat16), preferred_element_type=jnp.float32)
        y = y + shift
        if relu:
            y = jnp.maximum(y, 0.0)
        h = y.astype(jnp.bfloat16) if li + 1 < n_layers else y
    return h.astype(jnp.float32)


def reference_f32(x, raw):
    """Full-f32 reference of the original module (unfolded eval-mode BN)."""
    h = x
    for p in raw:
        y = h @ p["w"]
        if p["bn"] is not None:
            gamma, beta, mean, var, eps = p["bn"]
            y = (y - mean) / jnp.sqrt(var + eps) * gamma + beta
        if p["bias"] is not None:
            y = y + p["bias"]
        if p["relu"]:
            y = jnp.maximum(y, 0.0)
        h = y
    return h


def _check(x, params, folded, raw, tile_n):
    out = jax.block_until_ready(linear_mlp_forward(x, params, tile_n=tile_n))
    assert out.shape == (x.shape[0], params["d_out"]), out.shape
    ref_m = reference_matched(x, folded)
    assert jnp.allclose(out, ref_m, atol=5e-3, rtol=5e-3), \
        "mismatch vs matched-precision reference"
    ref32 = reference_f32(x, raw)
    assert jnp.allclose(out, ref32, atol=1e-1, rtol=1e-1), \
        "mismatch vs f32 module reference"
    return out


if __name__ == "__main__":
    key = jax.random.PRNGKey(0)

    # Case 1: LinearMLP(mlp_spec=[32, 64, 16]) on a tiny single-tile batch.
    k1, k2, key = jax.random.split(key, 3)
    spec1 = [32, 64, 16]
    params1, folded1, raw1 = init_linear_mlp_params(k1, spec1)
    x1 = jax.random.normal(k2, (8, spec1[0]), jnp.float32)
    _check(x1, params1, folded1, raw1, tile_n=512)

    # Case 2: hidden dim > 128 lanes, batch not a multiple of the tile
    # (multi-tile grid with a partial last tile), non-128-aligned output width.
    k3, k4, key = jax.random.split(key, 3)
    spec2 = [32, 200, 16]
    params2, folded2, raw2 = init_linear_mlp_params(k3, spec2)
    x2 = jax.random.normal(k4, (300, spec2[0]), jnp.float32)
    _check(x2, params2, folded2, raw2, tile_n=128)

    print("KERNEL_OK")
</pallas_src>

<mosaic_0001>
module attributes {stable_mosaic.version = 11 : i64} {
  func.func @_fused_mlp_kernel(%arg0: i32, %arg1: memref<8x32xf32, #tpu.memory_space<vmem>>, %arg2: memref<32x128xbf16, #tpu.memory_space<vmem>>, %arg3: memref<1x128xf32, #tpu.memory_space<vmem>>, %arg4: memref<128x128xbf16, #tpu.memory_space<vmem>>, %arg5: memref<1x128xf32, #tpu.memory_space<vmem>>, %arg6: memref<8x128xf32, #tpu.memory_space<vmem>>) attributes {dimension_semantics = [#tpu.dimension_semantics<parallel>], iteration_bounds = array<i64: 1>, scalar_prefetch = 0 : i64, scratch_operands = 0 : i64, tpu.core_type = #tpu.core_type<tc>, window_params = [{transform_indices = @transform_0, window_bounds = array<i64: 8, 32>}, {pipeline_mode = #tpu.pipeline_mode<synchronous>, transform_indices = @transform_1, window_bounds = array<i64: 32, 128>}, {pipeline_mode = #tpu.pipeline_mode<synchronous>, transform_indices = @transform_2, window_bounds = array<i64: 1, 128>}, {pipeline_mode = #tpu.pipeline_mode<synchronous>, transform_indices = @transform_3, window_bounds = array<i64: 128, 128>}, {pipeline_mode = #tpu.pipeline_mode<synchronous>, transform_indices = @transform_4, window_bounds = array<i64: 1, 128>}, {transform_indices = @transform_5, window_bounds = array<i64: 8, 128>}]} {
    %c0 = arith.constant 0 : index
    %c0_0 = arith.constant 0 : index
    %0 = vector.load %arg1[%c0, %c0_0] : memref<8x32xf32, #tpu.memory_space<vmem>>, vector<8x32xf32>
    %1 = arith.truncf %0 : vector<8x32xf32> to vector<8x32xbf16>
    %c0_1 = arith.constant 0 : index
    %c0_2 = arith.constant 0 : index
    %2 = vector.load %arg2[%c0_1, %c0_2] : memref<32x128xbf16, #tpu.memory_space<vmem>>, vector<32x128xbf16>
    %cst = arith.constant dense<0.000000e+00> : vector<8x128xf32>
    %3 = tpu.matmul %1, %2, %cst {dimension_numbers = #tpu.dot_dimension_numbers<[1], [0], [0], [1], [0, 0, 1, 1], [], []>} : vector<8x32xbf16>, vector<32x128xbf16>, vector<8x128xf32> -> vector<8x128xf32>
    %c0_3 = arith.constant 0 : index
    %c0_4 = arith.constant 0 : index
    %4 = vector.load %arg3[%c0_3, %c0_4] : memref<1x128xf32, #tpu.memory_space<vmem>>, vector<1x128xf32>
    %5 = vector.broadcast %4 : vector<1x128xf32> to vector<8x128xf32>
    %6 = arith.addf %3, %5 : vector<8x128xf32>
    %cst_5 = arith.constant 0.000000e+00 : f32
    %7 = vector.broadcast %cst_5 : f32 to vector<8x128xf32>
    %8 = arith.maximumf %6, %7 : vector<8x128xf32>
    %9 = arith.truncf %8 : vector<8x128xf32> to vector<8x128xbf16>
    %c0_6 = arith.constant 0 : index
    %c0_7 = arith.constant 0 : index
    %10 = vector.load %arg4[%c0_6, %c0_7] : memref<128x128xbf16, #tpu.memory_space<vmem>>, vector<128x128xbf16>
    %cst_8 = arith.constant dense<0.000000e+00> : vector<8x128xf32>
    %11 = tpu.matmul %9, %10, %cst_8 {dimension_numbers = #tpu.dot_dimension_numbers<[1], [0], [0], [1], [0, 0, 1, 1], [], []>} : vector<8x128xbf16>, vector<128x128xbf16>, vector<8x128xf32> -> vector<8x128xf32>
    %c0_9 = arith.constant 0 : index
    %c0_10 = arith.constant 0 : index
    %12 = vector.load %arg5[%c0_9, %c0_10] : memref<1x128xf32, #tpu.memory_space<vmem>>, vector<1x128xf32>
    %13 = vector.broadcast %12 : vector<1x128xf32> to vector<8x128xf32>
    %14 = arith.addf %11, %13 : vector<8x128xf32>
    %c0_11 = arith.constant 0 : index
    %c0_12 = arith.constant 0 : index
    %15 = vector.load %arg6[%c0_11, %c0_12] : memref<8x128xf32, #tpu.memory_space<vmem>>, vector<8x128xf32>
    tpu.vector_store %arg6[%c0_11, %c0_12], %14 {strides = array<i32>} : memref<8x128xf32, #tpu.memory_space<vmem>>, vector<8x128xf32>,
    return
  }
  func.func @transform_0(%arg0: i32) -> (i32, i32) {
    %c0_i32 = arith.constant 0 : i32
    %c0_i32_0 = arith.constant 0 : i32
    return %arg0, %c0_i32 : i32, i32
  }
  func.func @transform_1(%arg0: i32) -> (i32, i32) {
    %c0_i32 = arith.constant 0 : i32
    %c0_i32_0 = arith.constant 0 : i32
    %c0_i32_1 = arith.constant 0 : i32
    return %c0_i32, %c0_i32_0 : i32, i32
  }
  func.func @transform_2(%arg0: i32) -> (i32, i32) {
    %c0_i32 = arith.constant 0 : i32
    %c0_i32_0 = arith.constant 0 : i32
    %c0_i32_1 = arith.constant 0 : i32
    return %c0_i32, %c0_i32_0 : i32, i32
  }
  func.func @transform_3(%arg0: i32) -> (i32, i32) {
    %c0_i32 = arith.constant 0 : i32
    %c0_i32_0 = arith.constant 0 : i32
    %c0_i32_1 = arith.constant 0 : i32
    return %c0_i32, %c0_i32_0 : i32, i32
  }
  func.func @transform_4(%arg0: i32) -> (i32, i32) {
    %c0_i32 = arith.constant 0 : i32
    %c0_i32_0 = arith.constant 0 : i32
    %c0_i32_1 = arith.constant 0 : i32
    return %c0_i32, %c0_i32_0 : i32, i32
  }
  func.func @transform_5(%arg0: i32) -> (i32, i32) {
    %c0_i32 = arith.constant 0 : i32
    %c0_i32_0 = arith.constant 0 : i32
    return %arg0, %c0_i32 : i32, i32
  }
}

module attributes {stable_mosaic.version = 11 : i64} {
  func.func @_fused_mlp_kernel(%arg0: i32, %arg1: memref<8x32xf32, #tpu.memory_space<vmem>>, %arg2: memref<32x128xbf16, #tpu.memory_space<vmem>>, %arg3: memref<1x128xf32, #tpu.memory_space<vmem>>, %arg4: memref<128x128xbf16, #tpu.memory_space<vmem>>, %arg5: memref<1x128xf32, #tpu.memory_space<vmem>>, %arg6: memref<8x128xf32, #tpu.memory_space<vmem>>) attributes {dimension_semantics = [#tpu.dimension_semantics<parallel>], iteration_bounds = array<i64: 1>, scalar_prefetch = 0 : i64, scratch_operands = 0 : i64, tpu.core_type = #tpu.core_type<tc>, window_params = [{transform_indices = @transform_0, window_bounds = array<i64: 8, 32>}, {pipeline_mode = #tpu.pipeline_mode<synchronous>, transform_indices = @transform_1, window_bounds = array<i64: 32, 128>}, {pipeline_mode = #tpu.pipeline_mode<synchronous>, transform_indices = @transform_2, window_bounds = array<i64: 1, 128>}, {pipeline_mode = #tpu.pipeline_mode<synchronous>, transform_indices = @transform_3, window_bounds = array<i64: 128, 128>}, {pipeline_mode = #tpu.pipeline_mode<synchronous>, transform_indices = @transform_4, window_bounds = array<i64: 1, 128>}, {transform_indices = @transform_5, window_bounds = array<i64: 8, 128>}]} {
    %c0 = arith.constant 0 : index
    %c0_0 = arith.constant 0 : index
    %0 = vector.load %arg1[%c0, %c0_0] : memref<8x32xf32, #tpu.memory_space<vmem>>, vector<8x32xf32>
    %1 = arith.truncf %0 : vector<8x32xf32> to vector<8x32xbf16>
    %c0_1 = arith.constant 0 : index
    %c0_2 = arith.constant 0 : index
    %2 = vector.load %arg2[%c0_1, %c0_2] : memref<32x128xbf16, #tpu.memory_space<vmem>>, vector<32x128xbf16>
    %cst = arith.constant dense<0.000000e+00> : vector<8x128xf32>
    %3 = tpu.matmul %1, %2, %cst {dimension_numbers = #tpu.dot_dimension_numbers<[1], [0], [0], [1], [0, 0, 1, 1], [], []>} : vector<8x32xbf16>, vector<32x128xbf16>, vector<8x128xf32> -> vector<8x128xf32>
    %c0_3 = arith.constant 0 : index
    %c0_4 = arith.constant 0 : index
    %4 = vector.load %arg3[%c0_3, %c0_4] : memref<1x128xf32, #tpu.memory_space<vmem>>, vector<1x128xf32>
    %5 = vector.broadcast %4 : vector<1x128xf32> to vector<8x128xf32>
    %6 = arith.addf %3, %5 : vector<8x128xf32>
    %cst_5 = arith.constant 0.000000e+00 : f32
    %7 = vector.broadcast %cst_5 : f32 to vector<8x128xf32>
    %8 = arith.maximumf %6, %7 : vector<8x128xf32>
    %9 = arith.truncf %8 : vector<8x128xf32> to vector<8x128xbf16>
    %c0_6 = arith.constant 0 : index
    %c0_7 = arith.constant 0 : index
    %10 = vector.load %arg4[%c0_6, %c0_7] : memref<128x128xbf16, #tpu.memory_space<vmem>>, vector<128x128xbf16>
    %cst_8 = arith.constant dense<0.000000e+00> : vector<8x128xf32>
    %11 = tpu.matmul %9, %10, %cst_8 {dimension_numbers = #tpu.dot_dimension_numbers<[1], [0], [0], [1], [0, 0, 1, 1], [], []>} : vector<8x128xbf16>, vector<128x128xbf16>, vector<8x128xf32> -> vector<8x128xf32>
    %c0_9 = arith.constant 0 : index
    %c0_10 = arith.constant 0 : index
    %12 = vector.load %arg5[%c0_9, %c0_10] : memref<1x128xf32, #tpu.memory_space<vmem>>, vector<1x128xf32>
    %13 = vector.broadcast %12 : vector<1x128xf32> to vector<8x128xf32>
    %14 = arith.addf %11, %13 : vector<8x128xf32>
    %c0_11 = arith.constant 0 : index
    %c0_12 = arith.constant 0 : index
    %15 = vector.load %arg6[%c0_11, %c0_12] : memref<8x128xf32, #tpu.memory_space<vmem>>, vector<8x128xf32>
    tpu.vector_store %arg6[%c0_11, %c0_12], %14 {strides = array<i32>} : memref<8x128xf32, #tpu.memory_space<vmem>>, vector<8x128xf32>,
    return
  }
  func.func @transform_0(%arg0: i32) -> (i32, i32) {
    %c0_i32 = arith.constant 0 : i32
    %c0_i32_0 = arith.constant 0 : i32
    return %arg0, %c0_i32 : i32, i32
  }
  func.func @transform_1(%arg0: i32) -> (i32, i32) {
    %c0_i32 = arith.constant 0 : i32
    %c0_i32_0 = arith.constant 0 : i32
    %c0_i32_1 = arith.constant 0 : i32
    return %c0_i32, %c0_i32_0 : i32, i32
  }
  func.func @transform_2(%arg0: i32) -> (i32, i32) {
    %c0_i32 = arith.constant 0 : i32
    %c0_i32_0 = arith.constant 0 : i32
    %c0_i32_1 = arith.constant 0 : i32
    return %c0_i32, %c0_i32_0 : i32, i32
  }
  func.func @transform_3(%arg0: i32) -> (i32, i32) {
    %c0_i32 = arith.constant 0 : i32
    %c0_i32_0 = arith.constant 0 : i32
    %c0_i32_1 = arith.constant 0 : i32
    return %c0_i32, %c0_i32_0 : i32, i32
  }
  func.func @transform_4(%arg0: i32) -> (i32, i32) {
    %c0_i32 = arith.constant 0 : i32
    %c0_i32_0 = arith.constant 0 : i32
    %c0_i32_1 = arith.constant 0 : i32
    return %c0_i32, %c0_i32_0 : i32, i32
  }
  func.func @transform_5(%arg0: i32) -> (i32, i32) {
    %c0_i32 = arith.constant 0 : i32
    %c0_i32_0 = arith.constant 0 : i32
    return %arg0, %c0_i32 : i32, i32
  }
}

</mosaic_0001>

<bundles_post_ra>
// kernel: tpu_custom_call.1
= control target key start
LH: loop header
LB: loop body
LE: loop exit
PB: predicated region body
PF: predicated region fallthrough
CT: control target
= control target key end

     0   :  { %10 = vsyncpa [#allocation3], 0  ;;  %s523_s0 = inlined_call_operand.hbm [shape: f32[8,32], index: 0, kind: input, shape index: {}]   ;;  %s524_s1 = inlined_call_operand.hbm [shape: bf16[32,128], index: 1, kind: input, shape index: {}]   ;;  %s525_s2 = inlined_call_operand.vmem [shape: f32[1,128], index: 2, kind: input, shape index: {}]   ;;  %s526_s3 = inlined_call_operand.hbm [shape: bf16[128,128], index: 3, kind: input, shape index: {}]   ;;  %s527_s4 = inlined_call_operand.vmem [shape: f32[1,128], index: 4, kind: input, shape index: {}]   ;;  %s528_s5 = inlined_call_operand.hbm [shape: f32[8,128], index: 5, kind: output, shape index: {}]  }
   0x1   :  { %11 = vsyncpa [#allocation6], 0 }
   0x2   :  { %12 = vsyncpa [#allocation4], 0  ;;  %s425_s18 = smov [#allocation5]   ;;  %s331_s22 = scalar_lea.hbm %s524_s1, 256 }
   0x3   :  { %s28_s19 = sshll.u32 %s425_s18, 4  ;;  %p332_p0 = scmp.ne.s32.totalorder %s524_s1, %s331_s22  ;;  %s29_s19 = int_to_ptr.vmem [resolvable:$true] %s28_s19 }
   0x4   :  { %p335_p1 = scmp.lt.u32.totalorder %s331_s22, %s524_s1 }
   0x6   :  { %p337_p2 = pnand %p335_p1, %p332_p0 }
   0x8   :  { %340 = shalt.err (!%p337_p2)
}
   0x9   :  { %s341_s27 = scalar_lea.vmem %s29_s19, 256  ;;  %p346_p4 = scmp.lt.s32.totalorder %s29_s19, %s29_s19 }
   0xa   :  { %p342_p3 = scmp.ne.s32.totalorder %s29_s19, %s341_s27  ;;  %p347_p5 = scmp.lt.s32.totalorder %s341_s27, %s341_s27 }
   0xc   :  { %p348_p6 = por %p347_p5, %p346_p4 }
   0xe   :  { %p349_p7 = pnand %p348_p6, %p342_p3 }
  0x10   :  { %352 = shalt.err (!%p349_p7)
}
  0x11   :  { %s426_s28 = smov 64   ;;  %s427_s29 = smov 4  }
  0x12   :  { %34 = dma.hbm_to_vmem [thread:$0]  %s524_s1, 256, %s29_s19, [#allocation6], %s426_s28, %s426_s28, %s427_s29  }
  0x13   :  { %s428_s7 = smov [#allocation2]   ;;  %s429_s9 = smov [#allocation7]  }
  0x14   :  { %s19_s8 = sshll.u32 %s428_s7, 4  ;;  %s42_s10 = sshll.u32 %s429_s9, 4  ;;  %s20_s8 = int_to_ptr.vmem [resolvable:$true] %s19_s8  ;;  %s43_s10 = int_to_ptr.vmem [resolvable:$true] %s42_s10 }
  0x15   :  { %s353_s13 = scalar_lea.hbm %s523_s0, 128 }
  0x16   :  { %p354_p8 = scmp.ne.s32.totalorder %s523_s0, %s353_s13  ;;  %p357_p9 = scmp.lt.u32.totalorder %s353_s13, %s523_s0 }
  0x18   :  { %p359_p10 = pnand %p357_p9, %p354_p8 }
  0x1a   :  { %362 = shalt.err (!%p359_p10)
}
  0x1b   :  { %s363_s1 = scalar_lea.vmem %s20_s8, 128  ;;  %p368_p12 = scmp.lt.s32.totalorder %s20_s8, %s20_s8 }
  0x1c   :  { %p364_p11 = scmp.ne.s32.totalorder %s20_s8, %s363_s1  ;;  %p369_p13 = scmp.lt.s32.totalorder %s363_s1, %s363_s1 }
  0x1e   :  { %p370_p0 = por %p369_p13, %p368_p12 }
  0x20   :  { %p371_p1 = pnand %p370_p0, %p364_p11 }
  0x22   :  { %374 = shalt.err (!%p371_p1)
}
  0x23   :  { %22 = dma.hbm_to_vmem [thread:$0]  %s523_s0, 128, %s20_s8, [#allocation3]  }
  0x24   :  { %s375_s22 = scalar_lea.hbm %s526_s3, 1024 }
  0x25   :  { %p376_p2 = scmp.ne.s32.totalorder %s526_s3, %s375_s22  ;;  %p379_p3 = scmp.lt.u32.totalorder %s375_s22, %s526_s3 }
  0x27   :  { %p381_p4 = pnand %p379_p3, %p376_p2 }
  0x29   :  { %384 = shalt.err (!%p381_p4)
}
  0x2a   :  { %s385_s27 = scalar_lea.vmem %s43_s10, 1024  ;;  %p390_p6 = scmp.lt.s32.totalorder %s43_s10, %s43_s10 }
  0x2b   :  { %p386_p5 = scmp.ne.s32.totalorder %s43_s10, %s385_s27  ;;  %p391_p7 = scmp.lt.s32.totalorder %s385_s27, %s385_s27 }
  0x2d   :  { %p392_p8 = por %p391_p7, %p390_p6 }
  0x2f   :  { %p393_p9 = pnand %p392_p8, %p386_p5 }
  0x31   :  { %396 = shalt.err (!%p393_p9)
}
  0x32   :  { %48 = dma.hbm_to_vmem [thread:$0]  %s526_s3, 1024, %s43_s10, [#allocation6], %s426_s28, %s426_s28, %s427_s29  }
  0x33   :  { %419 = dma.done.wait [#allocation3], 128  }
  0x34   :  { %420 = vsyncadd [#allocation3], 4294967168 }
  0x35   :  { %421 = dma.done.wait [#allocation6], 1280  }
  0x36   :  { %422 = vsyncadd [#allocation6], 4294966016  ;;  %v430_v0 = vmov 0.0   ;;  %vm431_vm0 = vmmov 0   ;;  %v321_v1 = vld [vmem:[#allocation5] sm:$0xff]   ;;  %v322_v2 = vld [vmem:[#allocation5 + $0x8] sm:$0xff]  }
  0x37   :  { %285 = vmatprep.subr.bf16.mxu0 %v430_v0  ;;  %289 = vmatprep.mubr.msk.bf16.mxu0 %vm431_vm0, %v430_v0  ;;  %v61_v3 = vld [vmem:[#allocation2] sm:$0xff]  ;;  %v323_v4 = vld [vmem:[#allocation7] sm:$0xff]   ;;  %vm86_vm1 = vcmask 261120   ;;  %v325_v7 = vld [vmem:[#allocation7 + $0x10] sm:$0xff]   ;;  %s432_s7 = smov [#allocation8]  }
  0x38   :  { %293 = vmatprep.subr.bf16.mxu1 %v430_v0  ;;  %309 = vmatprep.mubr.msk.bf16.mxu1 %vm431_vm0, %v430_v0  ;;  %v62_v5 = vpack.c.bf16 %v61_v3, %v61_v3  ;;  %v324_v6 = vld [vmem:[#allocation7 + $0x8] sm:$0xff]   ;;  %v326_v8 = vld [vmem:[#allocation7 + $0x18] sm:$0xff]   ;;  %v327_v9 = vld [vmem:[#allocation7 + $0x20] sm:$0xff]   ;;  %s250_s8 = sshll.u32 %s432_s7, 4  ;;  %s251_s8 = int_to_ptr.vmem [resolvable:$true] %s250_s8 }
  0x39   :  { %286 = vmatpush3.bf16.msra.mxu0 %v321_v1  ;;  %294 = vmatpush3.bf16.msra.mxu1 %v323_v4  ;;  %v328_v10 = vld [vmem:[#allocation7 + $0x28] sm:$0xff]   ;;  %v329_v11 = vld [vmem:[#allocation7 + $0x30] sm:$0xff]   ;;  %v330_v12 = vld [vmem:[#allocation7 + $0x38] sm:$0xff]   ;;  %p402_p11 = scmp.lt.s32.totalorder %s251_s8, %s251_s8 }
  0x3a   :  { %287 = vmatprep.subr.bf16.mxu0 %v430_v0  ;;  %295 = vmatprep.subr.bf16.mxu1 %v430_v0  ;;  %v260_v13 = vld [vmem:[%s525_s2] ss:$0 sm:$0xff]  ;;  %s397_s2 = scalar_lea.vmem %s251_s8, 128 }
  0x3b   :  { %v264_v21 = vld [vmem:[%s527_s4] ss:$0 sm:$0xff]  ;;  %p398_p10 = scmp.ne.s32.totalorder %s251_s8, %s397_s2  ;;  %p403_p12 = scmp.lt.s32.totalorder %s397_s2, %s397_s2 }
  0x3d   :  { %288 = vmatpush3.bf16.msra.mxu0 %v322_v2  ;;  %296 = vmatpush3.bf16.msra.mxu1 %v324_v6  ;;  %p404_p13 = por %p403_p12, %p402_p11 }
  0x3e   :  { %297 = vmatprep.subr.bf16.mxu1 %v430_v0 }
  0x3f   :  { %p405_p0 = pnand %p404_p13, %p398_p10 }
  0x40   :  { %290 = vmatmul.mubr.msk.bf16.vlgmr.msra.gmra.mrb[0].mxu0 %vm86_vm1, %v62_v5 }
  0x41   :  { %298 = vmatpush3.bf16.msra.mxu1 %v325_v7 }
  0x42   :  { %299 = vmatprep.subr.bf16.mxu1 %v430_v0 }
  0x45   :  { %300 = vmatpush3.bf16.msra.mxu1 %v326_v8 }
  0x46   :  { %301 = vmatprep.subr.bf16.mxu1 %v430_v0 }
  0x49   :  { %302 = vmatpush3.bf16.msra.mxu1 %v327_v9 }
  0x4a   :  { %303 = vmatprep.subr.bf16.mxu1 %v430_v0 }
  0x4d   :  { %304 = vmatpush3.bf16.msra.mxu1 %v328_v10 }
  0x4e   :  { %305 = vmatprep.subr.bf16.mxu1 %v430_v0 }
  0x51   :  { %306 = vmatpush3.bf16.msra.mxu1 %v329_v11 }
  0x52   :  { %307 = vmatprep.subr.bf16.mxu1 %v430_v0 }
  0x55   :  { %308 = vmatpush3.bf16.msra.mxu1 %v330_v12 }
 0x113   :  { %v124_v14 = vpop.f32.mrb[0].mxu0 }
 0x114   :  { %v125_v15 = vadd.f32 %v260_v13, %v124_v14  ;;  %v291_v16 = vpop.f32.mrb[1].mxu0 }
 0x115   :  { %v127_v17 = vpop.f32.mrb[2].mxu0 }
 0x116   :  { %v130_v18 = vmax.f32 %v125_v15, 0.0  ;;  %v292_v19 = vpop.f32.mrb[3].mxu0 }
 0x118   :  { %v131_v20 = vpack.c.bf16 %v130_v18, %v130_v18 }
 0x11a   :  { %310 = vmatmul.mubr.bf16.vlgmr.msra.gmra.mrb[0].mxu1 %v131_v20 }
 0x1ed   :  { %v237_v22 = vpop.f32.mrb[0].mxu1 }
 0x1ee   :  { %v238_v23 = vadd.f32 %v264_v21, %v237_v22  ;;  %v311_v24 = vpop.f32.mrb[1].mxu1 }
 0x1ef   :  { %v240_v25 = vpop.f32.mrb[2].mxu1 }
 0x1f0   :  { %243 = vst [vmem:[#allocation8] sm:$0xff] %v238_v23  ;;  %v312_v26 = vpop.f32.mrb[3].mxu1 }
 0x1f1   :  { %408 = shalt.err (!%p405_p0)
}
 0x1f2   :  { %s409_s4 = scalar_lea.hbm %s528_s5, 128 }
 0x1f3   :  { %p410_p1 = scmp.ne.s32.totalorder %s528_s5, %s409_s4  ;;  %p413_p2 = scmp.lt.u32.totalorder %s409_s4, %s528_s5 }
 0x1f5   :  { %p415_p3 = pnand %p413_p2, %p410_p1 }
 0x1f7   :  { %418 = shalt.err (!%p415_p3)
}
 0x1f8   :  { %253 = dma.vmem_to_hbm [thread:$0]  %s251_s8, 128, %s528_s5, [#allocation4]  }
 0x1f9   :  { %423 = dma.done.wait [#allocation4], 128  }
 0x1fa   :  { %424 = vsyncadd [#allocation4], 4294967168 }
 0x1fb   :  { %257 = vsyncpa [#allocation3], 1 }
 0x1fc   :  { %258 = vsyncpa [#allocation6], 1 }
 0x1fd   :  { %259 = vsyncpa [#allocation4], 1 }

// kernel: tpu_custom_call.1
= control target key start
LH: loop header
LB: loop body
LE: loop exit
PB: predicated region body
PF: predicated region fallthrough
CT: control target
= control target key end

     0   :  { %10 = vsyncpa [#allocation3], 0  ;;  %s523_s0 = inlined_call_operand.hbm [shape: f32[8,32], index: 0, kind: input, shape index: {}]   ;;  %s524_s1 = inlined_call_operand.hbm [shape: bf16[32,128], index: 1, kind: input, shape index: {}]   ;;  %s525_s2 = inlined_call_operand.vmem [shape: f32[1,128], index: 2, kind: input, shape index: {}]   ;;  %s526_s3 = inlined_call_operand.hbm [shape: bf16[128,128], index: 3, kind: input, shape index: {}]   ;;  %s527_s4 = inlined_call_operand.vmem [shape: f32[1,128], index: 4, kind: input, shape index: {}]   ;;  %s528_s5 = inlined_call_operand.hbm [shape: f32[8,128], index: 5, kind: output, shape index: {}]  }
   0x1   :  { %11 = vsyncpa [#allocation6], 0 }
   0x2   :  { %12 = vsyncpa [#allocation4], 0  ;;  %s425_s18 = smov [#allocation5]   ;;  %s331_s22 = scalar_lea.hbm %s524_s1, 256 }
   0x3   :  { %s28_s19 = sshll.u32 %s425_s18, 4  ;;  %p332_p0 = scmp.ne.s32.totalorder %s524_s1, %s331_s22  ;;  %s29_s19 = int_to_ptr.vmem [resolvable:$true] %s28_s19 }
   0x4   :  { %p335_p1 = scmp.lt.u32.totalorder %s331_s22, %s524_s1 }
   0x6   :  { %p337_p2 = pnand %p335_p1, %p332_p0 }
   0x8   :  { %340 = shalt.err (!%p337_p2)
}
   0x9   :  { %s341_s27 = scalar_lea.vmem %s29_s19, 256  ;;  %p346_p4 = scmp.lt.s32.totalorder %s29_s19, %s29_s19 }
   0xa   :  { %p342_p3 = scmp.ne.s32.totalorder %s29_s19, %s341_s27  ;;  %p347_p5 = scmp.lt.s32.totalorder %s341_s27, %s341_s27 }
   0xc   :  { %p348_p6 = por %p347_p5, %p346_p4 }
   0xe   :  { %p349_p7 = pnand %p348_p6, %p342_p3 }
  0x10   :  { %352 = shalt.err (!%p349_p7)
}
  0x11   :  { %s426_s28 = smov 64   ;;  %s427_s29 = smov 4  }
  0x12   :  { %34 = dma.hbm_to_vmem [thread:$0]  %s524_s1, 256, %s29_s19, [#allocation6], %s426_s28, %s426_s28, %s427_s29  }
  0x13   :  { %s428_s7 = smov [#allocation2]   ;;  %s429_s9 = smov [#allocation7]  }
  0x14   :  { %s19_s8 = sshll.u32 %s428_s7, 4  ;;  %s42_s10 = sshll.u32 %s429_s9, 4  ;;  %s20_s8 = int_to_ptr.vmem [resolvable:$true] %s19_s8  ;;  %s43_s10 = int_to_ptr.vmem [resolvable:$true] %s42_s10 }
  0x15   :  { %s353_s13 = scalar_lea.hbm %s523_s0, 128 }
  0x16   :  { %p354_p8 = scmp.ne.s32.totalorder %s523_s0, %s353_s13  ;;  %p357_p9 = scmp.lt.u32.totalorder %s353_s13, %s523_s0 }
  0x18   :  { %p359_p10 = pnand %p357_p9, %p354_p8 }
  0x1a   :  { %362 = shalt.err (!%p359_p10)
}
  0x1b   :  { %s363_s1 = scalar_lea.vmem %s20_s8, 128  ;;  %p368_p12 = scmp.lt.s32.totalorder %s20_s8, %s20_s8 }
  0x1c   :  { %p364_p11 = scmp.ne.s32.totalorder %s20_s8, %s363_s1  ;;  %p369_p13 = scmp.lt.s32.totalorder %s363_s1, %s363_s1 }
  0x1e   :  { %p370_p0 = por %p369_p13, %p368_p12 }
  0x20   :  { %p371_p1 = pnand %p370_p0, %p364_p11 }
  0x22   :  { %374 = shalt.err (!%p371_p1)
}
  0x23   :  { %22 = dma.hbm_to_vmem [thread:$0]  %s523_s0, 128, %s20_s8, [#allocation3]  }
  0x24   :  { %s375_s22 = scalar_lea.hbm %s526_s3, 1024 }
  0x25   :  { %p376_p2 = scmp.ne.s32.totalorder %s526_s3, %s375_s22  ;;  %p379_p3 = scmp.lt.u32.totalorder %s375_s22, %s526_s3 }
  0x27   :  { %p381_p4 = pnand %p379_p3, %p376_p2 }
  0x29   :  { %384 = shalt.err (!%p381_p4)
}
  0x2a   :  { %s385_s27 = scalar_lea.vmem %s43_s10, 1024  ;;  %p390_p6 = scmp.lt.s32.totalorder %s43_s10, %s43_s10 }
  0x2b   :  { %p386_p5 = scmp.ne.s32.totalorder %s43_s10, %s385_s27  ;;  %p391_p7 = scmp.lt.s32.totalorder %s385_s27, %s385_s27 }
  0x2d   :  { %p392_p8 = por %p391_p7, %p390_p6 }
  0x2f   :  { %p393_p9 = pnand %p392_p8, %p386_p5 }
  0x31   :  { %396 = shalt.err (!%p393_p9)
}
  0x32   :  { %48 = dma.hbm_to_vmem [thread:$0]  %s526_s3, 1024, %s43_s10, [#allocation6], %s426_s28, %s426_s28, %s427_s29  }
  0x33   :  { %419 = dma.done.wait [#allocation3], 128  }
  0x34   :  { %420 = vsyncadd [#allocation3], 4294967168 }
  0x35   :  { %421 = dma.done.wait [#allocation6], 1280  }
  0x36   :  { %422 = vsyncadd [#allocation6], 4294966016  ;;  %v430_v0 = vmov 0.0   ;;  %vm431_vm0 = vmmov 0   ;;  %v321_v1 = vld [vmem:[#allocation5] sm:$0xff]   ;;  %v322_v2 = vld [vmem:[#allocation5 + $0x8] sm:$0xff]  }
  0x37   :  { %285 = vmatprep.subr.bf16.mxu0 %v430_v0  ;;  %289 = vmatprep.mubr.msk.bf16.mxu0 %vm431_vm0, %v430_v0  ;;  %v61_v3 = vld [vmem:[#allocation2] sm:$0xff]  ;;  %v323_v4 = vld [vmem:[#allocation7] sm:$0xff]   ;;  %vm86_vm1 = vcmask 261120   ;;  %v325_v7 = vld [vmem:[#allocation7 + $0x10] sm:$0xff]   ;;  %s432_s7 = smov [#allocation8]  }
  0x38   :  { %293 = vmatprep.subr.bf16.mxu1 %v430_v0  ;;  %309 = vmatprep.mubr.msk.bf16.mxu1 %vm431_vm0, %v430_v0  ;;  %v62_v5 = vpack.c.bf16 %v61_v3, %v61_v3  ;;  %v324_v6 = vld [vmem:[#allocation7 + $0x8] sm:$0xff]   ;;  %v326_v8 = vld [vmem:[#allocation7 + $0x18] sm:$0xff]   ;;  %v327_v9 = vld [vmem:[#allocation7 + $0x20] sm:$0xff]   ;;  %s250_s8 = sshll.u32 %s432_s7, 4  ;;  %s251_s8 = int_to_ptr.vmem [resolvable:$true] %s250_s8 }
  0x39   :  { %286 = vmatpush3.bf16.msra.mxu0 %v321_v1  ;;  %294 = vmatpush3.bf16.msra.mxu1 %v323_v4  ;;  %v328_v10 = vld [vmem:[#allocation7 + $0x28] sm:$0xff]   ;;  %v329_v11 = vld [vmem:[#allocation7 + $0x30] sm:$0xff]   ;;  %v330_v12 = vld [vmem:[#allocation7 + $0x38] sm:$0xff]   ;;  %p402_p11 = scmp.lt.s32.totalorder %s251_s8, %s251_s8 }
  0x3a   :  { %287 = vmatprep.subr.bf16.mxu0 %v430_v0  ;;  %295 = vmatprep.subr.bf16.mxu1 %v430_v0  ;;  %v260_v13 = vld [vmem:[%s525_s2] ss:$0 sm:$0xff]  ;;  %s397_s2 = scalar_lea.vmem %s251_s8, 128 }
  0x3b   :  { %v264_v21 = vld [vmem:[%s527_s4] ss:$0 sm:$0xff]  ;;  %p398_p10 = scmp.ne.s32.totalorder %s251_s8, %s397_s2  ;;  %p403_p12 = scmp.lt.s32.totalorder %s397_s2, %s397_s2 }
  0x3d   :  { %288 = vmatpush3.bf16.msra.mxu0 %v322_v2  ;;  %296 = vmatpush3.bf16.msra.mxu1 %v324_v6  ;;  %p404_p13 = por %p403_p12, %p402_p11 }
  0x3e   :  { %297 = vmatprep.subr.bf16.mxu1 %v430_v0 }
  0x3f   :  { %p405_p0 = pnand %p404_p13, %p398_p10 }
  0x40   :  { %290 = vmatmul.mubr.msk.bf16.vlgmr.msra.gmra.mrb[0].mxu0 %vm86_vm1, %v62_v5 }
  0x41   :  { %298 = vmatpush3.bf16.msra.mxu1 %v325_v7 }
  0x42   :  { %299 = vmatprep.subr.bf16.mxu1 %v430_v0 }
  0x45   :  { %300 = vmatpush3.bf16.msra.mxu1 %v326_v8 }
  0x46   :  { %301 = vmatprep.subr.bf16.mxu1 %v430_v0 }
  0x49   :  { %302 = vmatpush3.bf16.msra.mxu1 %v327_v9 }
  0x4a   :  { %303 = vmatprep.subr.bf16.mxu1 %v430_v0 }
  0x4d   :  { %304 = vmatpush3.bf16.msra.mxu1 %v328_v10 }
  0x4e   :  { %305 = vmatprep.subr.bf16.mxu1 %v430_v0 }
  0x51   :  { %306 = vmatpush3.bf16.msra.mxu1 %v329_v11 }
  0x52   :  { %307 = vmatprep.subr.bf16.mxu1 %v430_v0 }
  0x55   :  { %308 = vmatpush3.bf16.msra.mxu1 %v330_v12 }
 0x113   :  { %v124_v14 = vpop.f32.mrb[0].mxu0 }
 0x114   :  { %v125_v15 = vadd.f32 %v260_v13, %v124_v14  ;;  %v291_v16 = vpop.f32.mrb[1].mxu0 }
 0x115   :  { %v127_v17 = vpop.f32.mrb[2].mxu0 }
 0x116   :  { %v130_v18 = vmax.f32 %v125_v15, 0.0  ;;  %v292_v19 = vpop.f32.mrb[3].mxu0 }
 0x118   :  { %v131_v20 = vpack.c.bf16 %v130_v18, %v130_v18 }
 0x11a   :  { %310 = vmatmul.mubr.bf16.vlgmr.msra.gmra.mrb[0].mxu1 %v131_v20 }
 0x1ed   :  { %v237_v22 = vpop.f32.mrb[0].mxu1 }
 0x1ee   :  { %v238_v23 = vadd.f32 %v264_v21, %v237_v22  ;;  %v311_v24 = vpop.f32.mrb[1].mxu1 }
 0x1ef   :  { %v240_v25 = vpop.f32.mrb[2].mxu1 }
 0x1f0   :  { %243 = vst [vmem:[#allocation8] sm:$0xff] %v238_v23  ;;  %v312_v26 = vpop.f32.mrb[3].mxu1 }
 0x1f1   :  { %408 = shalt.err (!%p405_p0)
}
 0x1f2   :  { %s409_s4 = scalar_lea.hbm %s528_s5, 128 }
 0x1f3   :  { %p410_p1 = scmp.ne.s32.totalorder %s528_s5, %s409_s4  ;;  %p413_p2 = scmp.lt.u32.totalorder %s409_s4, %s528_s5 }
 0x1f5   :  { %p415_p3 = pnand %p413_p2, %p410_p1 }
 0x1f7   :  { %418 = shalt.err (!%p415_p3)
}
 0x1f8   :  { %253 = dma.vmem_to_hbm [thread:$0]  %s251_s8, 128, %s528_s5, [#allocation4]  }
 0x1f9   :  { %423 = dma.done.wait [#allocation4], 128  }
 0x1fa   :  { %424 = vsyncadd [#allocation4], 4294967168 }
 0x1fb   :  { %257 = vsyncpa [#allocation3], 1 }
 0x1fc   :  { %258 = vsyncpa [#allocation6], 1 }
 0x1fd   :  { %259 = vsyncpa [#allocation4], 1 }

</bundles_post_ra>
